<compile_context>
chip_gen: v6e
topology: v6e:2x2x1
jax: 0.10.0
libtpu: 0.0.40
codegen_flags: <defaults>
</compile_context>

<pallas_src>
import functools

import jax
import jax.numpy as jnp
import numpy as np
from jax import lax
from jax.experimental import pallas as pl
from jax.experimental.pallas import tpu as pltpu


def _cutout_kernel(centers_ref, hmap_ref, wmap_ref, x_ref, o_ref, *, nb, pad):
    """centers_ref: (2*N,) int32 in SMEM, interleaved (h_center, w_center).
    hmap_ref / wmap_ref: (P, 128) int32 maps giving the (h, w) coordinate of
    each lane of the flattened (padded) spatial plane; padded tail lanes hold
    a large negative sentinel so they never fall inside the cutout window.
    x_ref / o_ref: (Nb, C, P, 128) lane-dense block of Nb samples."""
    g = pl.program_id(0)
    hmap = hmap_ref[...]          # (P, 128) int32
    wmap = wmap_ref[...]          # (P, 128) int32

    def body(j, carry):
        s = g * nb + j
        hc = centers_ref[2 * s]       # scalar ALU
        wc = centers_ref[2 * s + 1]
        h_lo, h_hi = hc - pad, hc + pad
        w_lo, w_hi = wc - pad, wc + pad
        cut = ((hmap >= h_lo) & (hmap <= h_hi)
               & (wmap >= w_lo) & (wmap <= w_hi))[None, :, :]   # (1, P, 128)
        xj = x_ref[j]                                           # (C, P, 128)
        o_ref[j] = jnp.where(cut, jnp.zeros_like(xj), xj)
        return carry

    lax.fori_loop(0, nb, body, 0, unroll=(nb <= 8))


def _pick_nb(n, per_sample_bytes, target_bytes=1 << 20):
    """Largest divisor of n with block <= ~target_bytes per array, keeping the
    grid >= 2 steps when n >= 2 (so both v7x TensorCores get work)."""
    cap = max(1, target_bytes // max(per_sample_bytes, 1))
    best = 1
    for nb in range(1, n + 1):
        if nb > cap:
            break
        if n % nb != 0:
            continue
        if n >= 2 and (n // nb) < 2:
            continue
        best = nb
    return best


def cutout_pallas(x, centers, length):
    """x: (N, C, H, W); centers: (2*N,) int32 interleaved (h_center, w_center)."""
    N, C, H, W = x.shape
    pad = (length - 1) // 2
    HW = H * W
    HWp = ((HW + 127) // 128) * 128          # lane-dense plane (multiple of 128)
    P = HWp // 128

    # Layout-preserving merge of the trailing spatial dims; pad only if needed.
    x3 = x.reshape(N, C, HW)
    if HWp != HW:
        x3 = jnp.pad(x3, ((0, 0), (0, 0), (0, HWp - HW)))
    xq = x3.reshape(N, C, P, 128)

    # Precomputed plane coordinate maps -> no integer div/mod inside the kernel.
    sentinel = jnp.int32(-4 * (length + 1))  # never inside any cutout window
    hw = jnp.arange(HWp, dtype=jnp.int32)
    valid = hw < HW
    h_map = jnp.where(valid, hw // W, sentinel).reshape(P, 128)
    w_map = jnp.where(valid, hw % W, sentinel).reshape(P, 128)

    per_sample_bytes = C * HWp * x.dtype.itemsize
    nb = _pick_nb(N, per_sample_bytes)
    grid = (N // nb,)

    kernel = functools.partial(_cutout_kernel, nb=nb, pad=pad)
    grid_spec = pltpu.PrefetchScalarGridSpec(
        num_scalar_prefetch=1,
        grid=grid,
        in_specs=[
            pl.BlockSpec((P, 128), lambda g, c: (0, 0)),           # h_map (resident)
            pl.BlockSpec((P, 128), lambda g, c: (0, 0)),           # w_map (resident)
            pl.BlockSpec((nb, C, P, 128), lambda g, c: (g, 0, 0, 0)),
        ],
        out_specs=pl.BlockSpec((nb, C, P, 128), lambda g, c: (g, 0, 0, 0)),
    )
    out = pl.pallas_call(
        kernel,
        out_shape=jax.ShapeDtypeStruct((N, C, P, 128), x.dtype),
        grid_spec=grid_spec,
        compiler_params=pltpu.CompilerParams(
            dimension_semantics=("parallel",)),
    )(centers, h_map, w_map, xq)

    out = out.reshape(N, C, HWp)
    if HWp != HW:
        out = out[:, :, :HW]
    return out.reshape(N, C, H, W)


class CutOut:
    """JAX/Pallas port of the PyTorch CutOut augmentation."""

    def __init__(self, length):
        if length % 2 == 0:
            raise ValueError(
                "Currently CutOut only accepts odd lengths: length % 2 == 1")
        self.length = length
        self._padding = (length - 1) // 2
        # The PyTorch `_weight` buffer (all-ones conv1d kernel) is implicit:
        # convolving a one-hot with ones of width `length` is exactly the
        # |i - center| <= padding window, which the kernel tests directly.

    def __call__(self, key, x):
        # TODO(synk): randomness is drawn host-side with jax.random (same
        # distribution as torch.randint inside forward), not in-kernel; it
        # will not bit-match the PyTorch RNG stream.
        N, _, H, W = x.shape
        kh, kw = jax.random.split(key)
        h_center = jax.random.randint(kh, (N,), 0, H, dtype=jnp.int32)
        w_center = jax.random.randint(kw, (N,), 0, W, dtype=jnp.int32)
        centers = jnp.stack([h_center, w_center], axis=1).reshape(-1)  # (2N,)
        return cutout_pallas(x, centers, self.length)


def _reference(x, hc, wc, length):
    """Pure numpy reference with explicit centres."""
    N, _, H, W = x.shape
    pad = (length - 1) // 2
    mask = np.ones((N, 1, H, W), dtype=np.asarray(x).dtype)
    for n in range(N):
        h0, h1 = max(int(hc[n]) - pad, 0), min(int(hc[n]) + pad + 1, H)
        w0, w1 = max(int(wc[n]) - pad, 0), min(int(wc[n]) + pad + 1, W)
        mask[n, 0, h0:h1, w0:w1] = 0.0
    return np.asarray(x) * mask


if __name__ == "__main__":
    key = jax.random.PRNGKey(0)
    k_x, k_cut, k_x2, k_cut2 = jax.random.split(key, 4)

    # Main case: lane-exact plane (16*16 = 2 * 128).
    N, C, H, W = 2, 4, 16, 16
    length = 5
    x = jax.random.normal(k_x, (N, C, H, W), dtype=jnp.float32)
    cutout = CutOut(length=length)
    out = jax.block_until_ready(cutout(k_cut, x))

    kh, kw = jax.random.split(k_cut)
    hc = np.asarray(jax.random.randint(kh, (N,), 0, H, dtype=jnp.int32))
    wc = np.asarray(jax.random.randint(kw, (N,), 0, W, dtype=jnp.int32))
    np.testing.assert_allclose(np.asarray(out), _reference(x, hc, wc, length),
                               atol=0.0)

    # Secondary case: plane not a multiple of 128 (exercises the padded path).
    N2, C2, H2, W2 = 2, 3, 10, 10
    x2 = jax.random.normal(k_x2, (N2, C2, H2, W2), dtype=jnp.float32)
    out2 = jax.block_until_ready(cutout(k_cut2, x2))
    kh2, kw2 = jax.random.split(k_cut2)
    hc2 = np.asarray(jax.random.randint(kh2, (N2,), 0, H2, dtype=jnp.int32))
    wc2 = np.asarray(jax.random.randint(kw2, (N2,), 0, W2, dtype=jnp.int32))
    np.testing.assert_allclose(np.asarray(out2),
                               _reference(x2, hc2, wc2, length), atol=0.0)

    print("KERNEL_OK")
</pallas_src>

<mosaic_0001>
module attributes {stable_mosaic.version = 11 : i64} {
  func.func @_cutout_kernel(%arg0: i32, %arg1: memref<4xi32, #tpu.memory_space<smem>>, %arg2: memref<2x128xi32, #tpu.memory_space<vmem>>, %arg3: memref<2x128xi32, #tpu.memory_space<vmem>>, %arg4: memref<1x4x2x128xf32, #tpu.memory_space<vmem>>, %arg5: memref<1x4x2x128xf32, #tpu.memory_space<vmem>>) attributes {dimension_semantics = [#tpu.dimension_semantics<parallel>], iteration_bounds = array<i64: 2>, scalar_prefetch = 1 : i64, scratch_operands = 0 : i64, tpu.core_type = #tpu.core_type<tc>, window_params = [{pipeline_mode = #tpu.pipeline_mode<synchronous>, transform_indices = @transform_0, window_bounds = array<i64: 2, 128>}, {pipeline_mode = #tpu.pipeline_mode<synchronous>, transform_indices = @transform_1, window_bounds = array<i64: 2, 128>}, {transform_indices = @transform_2, window_bounds = array<i64: 1, 4, 2, 128>}, {transform_indices = @transform_3, window_bounds = array<i64: 1, 4, 2, 128>}]} {
    %c0 = arith.constant 0 : index
    %c0_0 = arith.constant 0 : index
    %0 = vector.load %arg2[%c0, %c0_0] : memref<2x128xi32, #tpu.memory_space<vmem>>, vector<2x128xi32>
    %c0_1 = arith.constant 0 : index
    %c0_2 = arith.constant 0 : index
    %1 = vector.load %arg3[%c0_1, %c0_2] : memref<2x128xi32, #tpu.memory_space<vmem>>, vector<2x128xi32>
    %c0_i32 = arith.constant 0 : i32
    %c1_i32 = arith.constant 1 : i32
    %2 = arith.muli %arg0, %c1_i32 : i32
    %3 = arith.addi %2, %c0_i32 : i32
    %c2_i32 = arith.constant 2 : i32
    %4 = arith.muli %c2_i32, %3 : i32
    %5 = arith.index_cast %4 : i32 to index
    %6 = memref.load %arg1[%5] : memref<4xi32, #tpu.memory_space<smem>>
    %c2_i32_3 = arith.constant 2 : i32
    %7 = arith.muli %c2_i32_3, %3 : i32
    %c1_i32_4 = arith.constant 1 : i32
    %8 = arith.addi %7, %c1_i32_4 : i32
    %9 = arith.index_cast %8 : i32 to index
    %10 = memref.load %arg1[%9] : memref<4xi32, #tpu.memory_space<smem>>
    %c2_i32_5 = arith.constant 2 : i32
    %11 = arith.subi %6, %c2_i32_5 : i32
    %c2_i32_6 = arith.constant 2 : i32
    %12 = arith.addi %6, %c2_i32_6 : i32
    %c2_i32_7 = arith.constant 2 : i32
    %13 = arith.subi %10, %c2_i32_7 : i32
    %c2_i32_8 = arith.constant 2 : i32
    %14 = arith.addi %10, %c2_i32_8 : i32
    %15 = vector.broadcast %11 : i32 to vector<2x128xi32>
    %16 = arith.cmpi sge, %0, %15 : vector<2x128xi32>
    %17 = vector.broadcast %12 : i32 to vector<2x128xi32>
    %18 = arith.cmpi sle, %0, %17 : vector<2x128xi32>
    %19 = arith.andi %16, %18 : vector<2x128xi1>
    %20 = vector.broadcast %13 : i32 to vector<2x128xi32>
    %21 = arith.cmpi sge, %1, %20 : vector<2x128xi32>
    %22 = arith.andi %19, %21 : vector<2x128xi1>
    %23 = vector.broadcast %14 : i32 to vector<2x128xi32>
    %24 = arith.cmpi sle, %1, %23 : vector<2x128xi32>
    %25 = arith.andi %22, %24 : vector<2x128xi1>
    %26 = vector.shape_cast %25 : vector<2x128xi1> to vector<1x2x128xi1>
    %27 = arith.index_cast %c0_i32 : i32 to index
    %c0_9 = arith.constant 0 : index
    %c0_10 = arith.constant 0 : index
    %c0_11 = arith.constant 0 : index
    %28 = vector.load %arg4[%27, %c0_9, %c0_10, %c0_11] : memref<1x4x2x128xf32, #tpu.memory_space<vmem>>, vector<1x4x2x128xf32>
    %29 = vector.shape_cast %28 : vector<1x4x2x128xf32> to vector<4x2x128xf32>
    %cst = arith.constant 0.000000e+00 : f32
    %30 = vector.broadcast %cst : f32 to vector<4x2x128xf32>
    %31 = vector.shape_cast %26 : vector<1x2x128xi1> to vector<1x2x128xi1>
    %32 = vector.broadcast %31 : vector<1x2x128xi1> to vector<4x2x128xi1>
    %33 = arith.select %32, %30, %29 : vector<4x2x128xi1>, vector<4x2x128xf32>
    %34 = arith.index_cast %c0_i32 : i32 to index
    %c0_12 = arith.constant 0 : index
    %c0_13 = arith.constant 0 : index
    %c0_14 = arith.constant 0 : index
    %35 = vector.load %arg5[%34, %c0_12, %c0_13, %c0_14] : memref<1x4x2x128xf32, #tpu.memory_space<vmem>>, vector<1x4x2x128xf32>
    %36 = vector.shape_cast %35 : vector<1x4x2x128xf32> to vector<4x2x128xf32>
    %37 = vector.shape_cast %33 : vector<4x2x128xf32> to vector<1x4x2x128xf32>
    tpu.vector_store %arg5[%34, %c0_12, %c0_13, %c0_14], %37 {strides = array<i32>} : memref<1x4x2x128xf32, #tpu.memory_space<vmem>>, vector<1x4x2x128xf32>,
    %c1_i32_15 = arith.constant 1 : i32
    return
  }
  func.func @transform_0(%arg0: i32, %arg1: memref<4xi32, #tpu.memory_space<smem>>) -> (i32, i32) {
    %c0_i32 = arith.constant 0 : i32
    %c0_i32_0 = arith.constant 0 : i32
    %c0_i32_1 = arith.constant 0 : i32
    return %c0_i32, %c0_i32_0 : i32, i32
  }
  func.func @transform_1(%arg0: i32, %arg1: memref<4xi32, #tpu.memory_space<smem>>) -> (i32, i32) {
    %c0_i32 = arith.constant 0 : i32
    %c0_i32_0 = arith.constant 0 : i32
    %c0_i32_1 = arith.constant 0 : i32
    return %c0_i32, %c0_i32_0 : i32, i32
  }
  func.func @transform_2(%arg0: i32, %arg1: memref<4xi32, #tpu.memory_space<smem>>) -> (i32, i32, i32, i32) {
    %c0_i32 = arith.constant 0 : i32
    %c0_i32_0 = arith.constant 0 : i32
    %c0_i32_1 = arith.constant 0 : i32
    %c0_i32_2 = arith.constant 0 : i32
    return %arg0, %c0_i32, %c0_i32_0, %c0_i32_1 : i32, i32, i32, i32
  }
  func.func @transform_3(%arg0: i32, %arg1: memref<4xi32, #tpu.memory_space<smem>>) -> (i32, i32, i32, i32) {
    %c0_i32 = arith.constant 0 : i32
    %c0_i32_0 = arith.constant 0 : i32
    %c0_i32_1 = arith.constant 0 : i32
    %c0_i32_2 = arith.constant 0 : i32
    return %arg0, %c0_i32, %c0_i32_0, %c0_i32_1 : i32, i32, i32, i32
  }
}

</mosaic_0001>

<bundles_post_ra>
// kernel: tpu_custom_call.1
= control target key start
LH: loop header
LB: loop body
LE: loop exit
PB: predicated region body
PF: predicated region fallthrough
CT: control target
= control target key end

     0   :  { %s558_s15 = smov [#allocation3]   ;;  %s786_s0 = inlined_call_operand.hbm [shape: s32[4], index: 0, kind: input, shape index: {}]   ;;  %s787_s1 = inlined_call_operand.hbm [shape: s32[2,128], index: 1, kind: input, shape index: {}]   ;;  %s788_s2 = inlined_call_operand.vmem [shape: s32[2,128], index: 2, kind: input, shape index: {}]   ;;  %s789_s3 = inlined_call_operand.hbm [shape: f32[2,4,2,128], index: 3, kind: input, shape index: {}]   ;;  %s790_s4 = inlined_call_operand.hbm [shape: f32[2,4,2,128], index: 4, kind: output, shape index: {}]  }
   0x1   :  { %10 = dma.hbm_to_smem %s786_s0, 16, %s558_s15, [#allocation2] }
   0x2   :  { %528 = dma.done.wait [#allocation2], 16 }
   0x3   :  { %529 = vsyncadd [#allocation2], 4294967280 }
   0x4   :  { %12 = sfence }
   0x5   :  { %13 = vsyncpa [#allocation5], 0 }
   0x6   :  { %14 = vsyncpa [#allocation8], 0 }
   0x7   :  { %16 = vsyncpa [#allocation8 + $0x1], 0 }
   0x8   :  { %17 = vsyncpa [#allocation6], 0 }
   0x9   :  { %19 = vsyncpa [#allocation6 + $0x1], 0  ;;  %s594_s18 = smov 0   ;;  %s596_s19 = smov 0  }
   0xa   :  { %s598_s20 = smov 0   ;;  %s600_s21 = smov 0  }
   0xb LB: > { %s615_s0 = sadd.s32 4294967295, %s556_s21   ;;  %s341_s22 = sadd.s32 4294967294, %s556_s21   ;;  %s556_s21 = sphi %s600_s21, %s813_s21   ;;  %s552_s20 = sphi %s598_s20, %s812_s20   ;;  %s548_s19 = sphi %s596_s19, %s811_s19   ;;  %s544_s18 = sphi %s594_s18, %s810_s18  }
   0xc   : > { %s619_s23 = sadd.s32 1, %s556_s21   ;;  %s74_s24 = sadd.s32 1, %s552_s20 }
   0xd   : > { %s71_s25 = ssub.s32 %s556_s21, %s619_s23  ;;  %p81_p0 = scmp.ne.s32.totalorder %s552_s20, %s548_s19 }
   0xe   : > { %p72_p1 = scmp.eq.s32.totalorder %s71_s25, 0  ;;  %p82_p2 = scmp.eq.s32.totalorder %s556_s21, 0 }
   0xf   : > { %p87_p3 = scmp.ne.s32.totalorder %s548_s19, %s544_s18  ;;  %p791_p4 = scmp.eq.s32.totalorder %s615_s0, 0 }
  0x10   : > { %s631_s26 = scalar_select %p72_p1, %s552_s20, %s74_s24  }
  0x11   : > { %p633_p5 = por %p82_p2, %p81_p0  ;;  %p639_p6 = por %p791_p4, %p87_p3 }
  0x12   : > { %p111_p7 = scmp.eq.s32.totalorder %s615_s0, 1  ;;  %p117_p8 = scmp.eq.s32.totalorder %s341_s22, 1 }
  0x13   : > { %s796_s28 = scalar_select %p639_p6, 1, 0 }
  0x14   : > { %p342_p9 = scmp.ge.s32.totalorder %s556_s21, 1  ;;  %p124_p10 = scmp.lt.s32.totalorder %s556_s21, 3 }
  0x15   : > { %p646_p11 = por %p111_p7, %p81_p0  ;;  %p650_p12 = por %p117_p8, %p87_p3 }
  0x16   : > { %p654_p13 = pnand %p342_p9, %p124_p10  ;;  %s559_s6 = smov [#allocation4]  }
  0x17   : > { %s797_s29 = scalar_select %p646_p11, 1, 0 }
  0x18   : > { %s798_s30 = scalar_select %p650_p12, 1, 0 }
  0x19   : > { %s799_s5 = scalar_select %p654_p13, 1, 0 }
  0x1a   : > { %p370_p2 = pneg %p654_p13  ;;  %s137_s7 = sshll.u32 %s559_s6, 4  ;;  %s138_s7 = int_to_ptr.vmem [resolvable:$true] %s137_s7 }
  0x1b   : > { %p383_p4 = scmp.lt.s32.totalorder %s556_s21, 2  ;;  %p800_p0 = scmp.eq.s32.totalorder %s615_s0, 0 }
  0x1c   : > { %s151_s9 = sand.u32 1, %s552_s20   ;;  %s443_s12 = scalar_lea.vmem %s138_s7, 32 }
  0x1d   : > { %p664_p7 = pnand %p370_p2, %p800_p0  ;;  %p671_p3 = pnand %p383_p4, %p633_p5 }
  0x1e   : > { %s345_s11 = sshll.u32 %s151_s9, 3  ;;  %p444_p9 = scmp.ne.s32.totalorder %s138_s7, %s443_s12 }
  0x1f   : > { %p434_p8 = pneg %p664_p7  ;;  %p451_p12 = scmp.lt.s32.totalorder %s138_s7, %s138_s7 }
  0x20   : > { %p452_p11 = scmp.lt.s32.totalorder %s443_s12, %s443_s12 }
  0x21   : > { %p446_p10 = pnand %p444_p9, %p434_p8 }
  0x22   : > { %p453_p2 = por %p452_p11, %p451_p12 }
  0x23   : > { %p447_p1 = pneg %p446_p10 }
  0x25   : > { %p454_p0 = pnand %p453_p2, %p447_p1 }
  0x27   : > { %457 = shalt.err (!%p454_p0)
}
  0x28   : > { %373 = dma.hbm_to_vmem [thread:$0]  (!%p664_p7), %s787_s1, 32, %s138_s7, [#allocation5]  }
  0x29   : > { %s360_s15 = sshll.u32 %s556_s21, 7  ;;  %s155_s16 = scalar_lea.vmem [#allocation7], %s345_s11 }
  0x2a   : > { %s162_s17 = sshll.u32 %s155_s16, 4  ;;  %s686_s25 = scalar_lea.hbm %s789_s3, %s360_s15  ;;  %s688_s17 = int_to_ptr.vmem [resolvable:$true] %s162_s17 }
  0x2b   : > { %s690_s27 = scalar_lea.sflag [#allocation8], %s151_s9  ;;  %s458_s6 = scalar_lea.hbm %s686_s25, 128 }
  0x2c   : > { %p459_p4 = scmp.ne.s32.totalorder %s686_s25, %s458_s6  ;;  %p460_p5 = pneg %p671_p3 }
  0x2d   : > { %s463_s11 = scalar_lea.hbm %s789_s3, 256  ;;  %p464_p1 = scmp.lt.s32.totalorder %s686_s25, %s789_s3 }
  0x2e   : > { %p461_p11 = pnand %p460_p5, %p459_p4  ;;  %p465_p7 = scmp.lt.s32.totalorder %s463_s11, %s458_s6 }
  0x30   : > { %p462_p12 = pneg %p461_p11  ;;  %p466_p8 = por %p465_p7, %p464_p1 }
  0x32   : > { %p467_p9 = pnand %p466_p8, %p462_p12 }
  0x34   : > { %470 = shalt.err (!%p467_p9)
}
  0x35   : > { %s471_s9 = scalar_lea.vmem %s688_s17, 128  ;;  %s560_s14 = smov [#allocation7]  }
  0x36   : > { %p472_p10 = scmp.ne.s32.totalorder %s688_s17, %s471_s9  ;;  %s476_s15 = sshll.u32 %s560_s14, 4  ;;  %s477_s15 = int_to_ptr.vmem [resolvable:$false] %s476_s15 }
  0x37   : > { %s478_s16 = scalar_lea.vmem %s477_s15, 256  ;;  %p479_p4 = scmp.lt.s32.totalorder %s688_s17, %s477_s15 }
  0x38   : > { %p474_p2 = pnand %p472_p10, %p460_p5  ;;  %p480_p11 = scmp.lt.s32.totalorder %s478_s16, %s471_s9 }
  0x3a   : > { %p475_p0 = pneg %p474_p2  ;;  %p481_p6 = por %p480_p11, %p479_p4 }
  0x3c   : > { %p482_p13 = pnand %p481_p6, %p475_p0 }
  0x3e   : > { %485 = shalt.err (!%p482_p13)
}
  0x3f   : > { %s561_s22 = smov 32   ;;  %s562_s24 = smov 2  }
  0x40   : > { %377 = dma.hbm_to_vmem [thread:$0]  (!%p671_p3), %s686_s25, 128, %s688_s17, %s690_s27, %s561_s22, %s561_s22, %s562_s24  }
  0x41   : > { %p803_p5 = scmp.ne.s32.totalorder %s799_s5, 0 }
  0x42   : > { %p804_p12 = scmp.eq.s32.totalorder (!%p803_p5), %s615_s0, 0 }
  0x43   : > { %174 = sbr.rel (%p803_p5) target bundleno = 107 (0x6b), region = 32 }
  0x48   : > { %531 = dma.done.wait (%p804_p12), [#allocation5], 32   ;;  %p805_p1 = pmov %p804_p12 }
  0x49   : > { %s718_s6 = sand.u32 1, %s548_s19   ;;  %p806_p6 = scmp.ne.s32.totalorder %s796_s28, 0 }
  0x4a   : > { %533 = vsyncadd (%p805_p1), [#allocation5], 4294967264  ;;  %s350_s7 = sshll.u32 %s718_s6, 3  ;;  %s181_s8 = scalar_lea.sflag [#allocation8], %s718_s6 }
  0x4b   : > { %s184_s11 = scalar_lea.vmem [#allocation7], %s350_s7 }
  0x4c   : > { %535 = dma.done.wait (%p806_p6), %s181_s8, 128  }
  0x4d   : > { %537 = vsyncadd (%p806_p6), %s181_s8, 4294967168  ;;  %s352_s5 = sshll.u32 %s615_s0, 1  ;;  %s727_s27 = scalar_lea.vmem [#allocation9], %s350_s7  ;;  %v207_v0 = vld [vmem:[#allocation4] sm:$0x3] }
  0x4e   : > { %s210_s10 = sld [smem:[#allocation3 + %s352_s5]]  ;;  %s211_s17 = sadd.s32 1, %s352_s5  ;;  %v208_v1 = vld [vmem:[%s788_s2] sm:$0x3]  ;;  %v228_v6 = vld [vmem:[%s184_s11] sm:$0x3] }
  0x4f   : > { %s212_s25 = sld [smem:[#allocation3 + %s211_s17]]  ;;  %s256_s12 = sshll.u32 %s727_s27, 4  ;;  %v229_v7 = vld [vmem:[%s184_s11 + $0x2] sm:$0x3]  ;;  %v230_v8 = vld [vmem:[%s184_s11 + $0x4] sm:$0x3]  ;;  %s734_s12 = int_to_ptr.vmem [resolvable:$true] %s256_s12 }
  0x50   : > { %s361_s22 = sshll.u32 %s615_s0, 7  ;;  %v231_v9 = vld [vmem:[%s184_s11 + $0x6] sm:$0x3]  ;;  %s243_s0 = scalar_lea.sflag [#allocation6], %s718_s6 }
  0x51   : > { %s739_s8 = scalar_lea.hbm %s790_s4, %s361_s22  ;;  %s486_s5 = scalar_lea.vmem %s734_s12, 128 }
  0x52   : > { %p487_p13 = scmp.ne.s32.totalorder %s734_s12, %s486_s5  ;;  %p807_p3 = scmp.ne.s32.totalorder %s797_s29, 0 }
  0x53   : > { %s563_s11 = smov [#allocation9]  }
  0x54   : > { %s353_s14 = sadd.s32 4294967294, %s210_s10  ;;  %s214_s15 = sadd.s32 2, %s210_s10 }
  0x55   : > { %s354_s16 = sadd.s32 4294967294, %s212_s25  ;;  %s216_s28 = sadd.s32 2, %s212_s25  ;;  %v217_v2 = vstv %s353_s14  ;;  %v219_v3 = vstv %s214_s15 }
  0x56   : > { %vm218_vm0 = vcmp.ge.s32.totalorder %v207_v0, %v217_v2  ;;  %vm220_vm1 = vcmp.le.s32.totalorder %v207_v0, %v219_v3  ;;  %v222_v4 = vstv %s354_s16  ;;  %v225_v5 = vstv %s216_s28  ;;  %p488_p7 = pnand %p487_p13, %p807_p3  ;;  %s490_s10 = sshll.u32 %s563_s11, 4  ;;  %s491_s10 = int_to_ptr.vmem [resolvable:$false] %s490_s10 }
  0x57   : > { %vm221_vm2 = vmand %vm218_vm0, %vm220_vm1  ;;  %vm223_vm3 = vcmp.ge.s32.totalorder %v208_v1, %v222_v4  ;;  %vm226_vm4 = vcmp.le.s32.totalorder %v208_v1, %v225_v5  ;;  %s492_s17 = scalar_lea.vmem %s491_s10, 256  ;;  %p493_p9 = scmp.lt.s32.totalorder %s734_s12, %s491_s10 }
  0x58   : > { %vm224_vm5 = vmand %vm221_vm2, %vm223_vm3  ;;  %p489_p8 = pneg %p488_p7  ;;  %p494_p10 = scmp.lt.s32.totalorder %s492_s17, %s486_s5 }
  0x59   : > { %vm227_vm6 = vmand %vm224_vm5, %vm226_vm4 }
  0x5a   : > { %v234_v10 = vsel %vm227_vm6, 0.0, %v228_v6  ;;  %v235_v11 = vsel %vm227_vm6, 0.0, %v229_v7  ;;  %v236_v12 = vsel %vm227_vm6, 0.0, %v230_v8  ;;  %v237_v13 = vsel %vm227_vm6, 0.0, %v231_v9  ;;  %p495_p2 = por %p494_p10, %p493_p9 }
  0x5b   : > { %238 = vst [vmem:[%s727_s27] sm:$0x3] %v234_v10  ;;  %239 = vst [vmem:[%s727_s27 + $0x2] sm:$0x3] %v235_v11 }
  0x5c   : > { %240 = vst [vmem:[%s727_s27 + $0x4] sm:$0x3] %v236_v12  ;;  %241 = vst [vmem:[%s727_s27 + $0x6] sm:$0x3] %v237_v13  ;;  %p496_p0 = pnand %p495_p2, %p489_p8 }
  0x5e   : > { %499 = shalt.err (!%p496_p0)
}
  0x5f   : > { %s500_s25 = scalar_lea.hbm %s739_s8, 128  ;;  %s504_s9 = scalar_lea.hbm %s790_s4, 256 }
  0x60   : > { %p501_p4 = scmp.ne.s32.totalorder %s739_s8, %s500_s25  ;;  %p505_p12 = scmp.lt.s32.totalorder %s739_s8, %s790_s4 }
  0x61   : > { %p506_p1 = scmp.lt.s32.totalorder %s504_s9, %s500_s25 }
  0x62   : > { %p502_p11 = pnand %p501_p4, %p807_p3 }
  0x63   : > { %p507_p6 = por %p506_p1, %p505_p12 }
  0x64   : > { %p503_p5 = pneg %p502_p11 }
  0x66   : > { %p508_p13 = pnand %p507_p6, %p503_p5 }
  0x68   : > { %511 = shalt.err (!%p508_p13)
}
  0x69   : > { %s564_s16 = smov 32   ;;  %s565_s28 = smov 2  }
  0x6a   : > { %368 = dma.vmem_to_hbm [thread:$0]  (%p807_p3), %s734_s12, 128, %s739_s8, %s243_s0, %s564_s16, %s564_s16, %s565_s28  }
  0x6b PF: > { %s271_s22 = sand.u32 1, %s544_s18   ;;  %p808_p7 = scmp.ne.s32.totalorder %s798_s30, 0 }
  0x6c   : > { %p809_p8 = scmp.ge.s32.totalorder %s556_s21, 2  ;;  %s272_s24 = scalar_lea.sflag [#allocation6], %s271_s22 }
  0x6e   : > { %p379_p9 = pnand %p809_p8, %p808_p7 }
  0x70   : > { %p380_p10 = pneg %p379_p9 }
  0x72   : > { %539 = dma.done.wait (%p380_p10), %s272_s24, 128  }
  0x73   : > { %541 = vsyncadd (%p380_p10), %s272_s24, 4294967168  ;;  %p22_p2 = scmp.ge.s32.totalorder %s619_s23, 4   ;;  %s810_s18 = smov %s548_s19 }
  0x74   : > { %s811_s19 = smov %s552_s20  ;;  %s812_s20 = smov %s631_s26 }
  0x75   : > { %s813_s21 = smov %s619_s23  ;;  %24 = sbr.rel (!%p22_p2) target bundleno = 11 (0xb), region = 82 }
  0x7a   :  { %277 = vsyncpa [#allocation5], 1 }
  0x7b   :  { %279 = vsyncpa [#allocation5 + $0x1], 1 }
  0x7c   :  { %280 = vsyncpa [#allocation8], 1 }
  0x7d   :  { %282 = vsyncpa [#allocation8 + $0x1], 1 }
  0x7e   :  { %283 = vsyncpa [#allocation6], 1 }
  0x7f   :  { %285 = vsyncpa [#allocation6 + $0x1], 1 }

</bundles_post_ra>
